<compile_context>
chip_gen: v6e
topology: v6e:2x2x1
jax: 0.10.0
libtpu: 0.0.40
codegen_flags: <defaults>
</compile_context>

<pallas_src>
import math
import functools

import jax
import jax.numpy as jnp
from jax import lax
from jax.experimental import pallas as pl
from jax.experimental.pallas import tpu as pltpu

_NEG_INF = -1e30                      # finite mask value: no inf/NaN propagation
_VMEM_LIMIT = 64 * 1024 * 1024        # v6e could go to 96 MiB; fits the v7x 64 MiB/TC budget


def _pick_tile(dim, target, multiple):
    """Largest divisor of `dim` <= target that is a multiple of `multiple`, else full dim."""
    if dim <= target:
        return dim
    for t in range(target, multiple - 1, -multiple):
        if dim % t == 0:
            return t
    return dim


def _pick_head_group(n_groups, dh, target=512):
    """Heads per projection column tile: largest g | n_groups with g*dh <= target and
    g*dh lane-aligned (multiple of 128).  Fallbacks keep the BlockSpec layout-legal."""
    cands = [g for g in range(1, n_groups + 1)
             if n_groups % g == 0 and g * dh <= target and (g * dh) % 128 == 0]
    if cands:
        return max(cands)
    return 1 if dh % 128 == 0 else n_groups   # n_groups => tile == full width (always legal)


# ----------------------------------------------------------------------------
# Stage 1: fused QKV projection, written head-major (B, 3H, S, dh).
#   grid (B, head-group, S-tile) with S innermost -> W/bias tiles stay resident.
# ----------------------------------------------------------------------------
def _qkv_proj_kernel(x_ref, w_ref, b_ref, o_ref, *, dh):
    # x: (1, ts, D); w: (D, G*dh); b: (1, G*dh); o: (1, G, ts, dh)
    y = jnp.dot(x_ref[0], w_ref[...], preferred_element_type=jnp.float32)
    y = y + b_ref[...].astype(jnp.float32)
    G = o_ref.shape[1]
    for g in range(G):                          # static epilogue reorder -> head-major output
        o_ref[0, g] = y[:, g * dh:(g + 1) * dh].astype(o_ref.dtype)


def _qkv_proj(x, w_in, b_in, *, n_heads, d_head, out_dtype):
    B, S, D = x.shape
    H3 = 3 * n_heads
    sub = 16 if x.dtype == jnp.bfloat16 else 8   # bf16 native sublane tile is (16, 128)
    ts = _pick_tile(S, 256, sub)
    G = _pick_head_group(H3, d_head)
    tn = G * d_head
    kernel = functools.partial(_qkv_proj_kernel, dh=d_head)
    return pl.pallas_call(
        kernel,
        out_shape=jax.ShapeDtypeStruct((B, H3, S, d_head), out_dtype),
        grid_spec=pltpu.PrefetchScalarGridSpec(
            num_scalar_prefetch=0,
            grid=(B, H3 // G, S // ts),          # S innermost: W column tile re-used
            in_specs=[
                pl.BlockSpec((1, ts, D), lambda b, n, s: (b, s, 0)),   # x tile
                pl.BlockSpec((D, tn), lambda b, n, s: (0, n)),         # W tile (resident over s)
                pl.BlockSpec((1, tn), lambda b, n, s: (0, n)),         # bias (resident over s)
                # NOTE: W/bias could also be single-buffered via pipeline_mode=pl.Buffered(1)
                # on v7x to reclaim VMEM; left at the default for lowering portability.
            ],
            out_specs=pl.BlockSpec((1, G, ts, d_head), lambda b, n, s: (b, n, s, 0)),
        ),
        compiler_params=pltpu.CompilerParams(
            dimension_semantics=("parallel", "parallel", "parallel"),
            vmem_limit_bytes=_VMEM_LIMIT),
    )(x, w_in, b_in)


# ----------------------------------------------------------------------------
# Stage 3: output projection, standard (B, S, D) layout, W-resident grid order.
# ----------------------------------------------------------------------------
def _out_proj_kernel(x_ref, w_ref, b_ref, o_ref):
    y = jnp.dot(x_ref[0], w_ref[...], preferred_element_type=jnp.float32)
    o_ref[0] = (y + b_ref[...].astype(jnp.float32)).astype(o_ref.dtype)


def _out_proj(x, w, b, *, out_dtype):
    B, S, D = x.shape
    N = w.shape[1]
    sub = 16 if x.dtype == jnp.bfloat16 else 8
    ts = _pick_tile(S, 256, sub)
    tn = _pick_tile(N, 512, 128)
    return pl.pallas_call(
        _out_proj_kernel,
        out_shape=jax.ShapeDtypeStruct((B, S, N), out_dtype),
        grid_spec=pltpu.PrefetchScalarGridSpec(
            num_scalar_prefetch=0,
            grid=(B, N // tn, S // ts),          # S innermost: W column tile resident
            in_specs=[
                pl.BlockSpec((1, ts, D), lambda b, n, s: (b, s, 0)),
                pl.BlockSpec((D, tn), lambda b, n, s: (0, n)),
                pl.BlockSpec((1, tn), lambda b, n, s: (0, n)),
            ],
            out_specs=pl.BlockSpec((1, ts, tn), lambda b, n, s: (b, s, n)),
        ),
        compiler_params=pltpu.CompilerParams(
            dimension_semantics=("parallel", "parallel", "parallel"),
            vmem_limit_bytes=_VMEM_LIMIT),
    )(x, w, b)


# ----------------------------------------------------------------------------
# Stage 2: flash attention.  Input is the head-major (B, 3H, S, dh) qkv tensor
# passed three times (head-block offsets 0/1/2 select q/k/v).  Output is (B, S, D).
# ----------------------------------------------------------------------------
def _flash_attn_kernel(q_ref, k_ref, v_ref, o_ref, m_sc, l_sc, acc_sc,
                       *, causal, tq, tk, dh, exp_dtype, approx_recip):
    qi = pl.program_id(1)
    ki = pl.program_id(2)
    nk = pl.num_programs(2)

    @pl.when(ki == 0)
    def _init():
        m_sc[...] = jnp.full(m_sc.shape, -jnp.inf, dtype=m_sc.dtype)
        l_sc[...] = jnp.zeros_like(l_sc)
        acc_sc[...] = jnp.zeros_like(acc_sc)

    def _step(masked):
        # q already carries 1/sqrt(dh) (folded into W_in) and is in the MXU/storage dtype.
        q = q_ref[0]                                  # (H, tq, dh)
        k = k_ref[0]                                  # (H, tk, dh)
        v = v_ref[0]                                  # (H, tk, dh)
        s = jnp.einsum("hqd,hkd->hqk", q, k,
                       preferred_element_type=jnp.float32)       # (H, tq, tk) f32
        if masked:
            # Only diagonal-straddling tiles build the mask; 2-D, broadcast over heads.
            row = lax.broadcasted_iota(jnp.int32, (tq, tk), 0) + qi * tq
            col = lax.broadcasted_iota(jnp.int32, (tq, tk), 1) + ki * tk
            s = jnp.where((col > row)[None, :, :], _NEG_INF, s)

        m_prev = m_sc[...]
        m_new = jnp.maximum(m_prev, s.max(axis=-1, keepdims=True))
        alpha = jnp.exp(m_prev - m_new)                           # f32
        p = jnp.exp((s - m_new).astype(exp_dtype))                # bf16 EUP on v6e/v7x, f32 on v5e
        l_sc[...] = alpha * l_sc[...] + jnp.sum(p.astype(jnp.float32),
                                                axis=-1, keepdims=True)
        pv = jnp.einsum("hqk,hkd->hqd", p.astype(v.dtype), v,
                        preferred_element_type=jnp.float32)
        acc_sc[...] = alpha * acc_sc[...] + pv
        m_sc[...] = m_new

    if causal:
        q_first = qi * tq
        q_last = q_first + (tq - 1)
        k_first = ki * tk
        k_last = k_first + (tk - 1)
        visited = k_first <= q_last          # tile not fully above the causal diagonal
        straddles = k_last > q_first         # tile needs masking

        @pl.when(jnp.logical_and(visited, straddles))
        def _():
            _step(True)

        @pl.when(jnp.logical_and(visited, jnp.logical_not(straddles)))
        def _():
            _step(False)
    else:
        _step(False)

    @pl.when(ki == nk - 1)
    def _finalize():
        l = l_sc[...]
        if approx_recip:
            o = acc_sc[...] * pl.reciprocal(l, approx=True)   # EUP; bf16 fast path only
        else:
            o = acc_sc[...] / l                               # exact normalization (f32 path)
        H = o.shape[0]
        for h in range(H):                   # head-major acc -> lane-dense (tq, D) output block
            o_ref[0, :, h * dh:(h + 1) * dh] = o[h].astype(o_ref.dtype)


def _flash_attention(qkv, *, n_heads, causal, out_dtype, exp_dtype, approx_recip,
                     q_tile=None, kv_tile=None):
    B, H3, S, dh = qkv.shape
    H = n_heads
    D = H * dh
    sub = 16 if qkv.dtype == jnp.bfloat16 else 8
    tq = q_tile or _pick_tile(S, 256, sub)    # v5e: pass q_tile=kv_tile=128
    tk = kv_tile or _pick_tile(S, 256, sub)

    if causal:
        # Clamp the KV block index so fully-masked grid steps re-reference the already
        # resident block -> Pallas elides the K/V DMA (the pl.when only skips compute).
        if tq == tk:
            def kv_idx(i, j):
                return jnp.minimum(j, i)
        else:
            def kv_idx(i, j):
                return jnp.minimum(j, (i * tq + tq - 1) // tk)
    else:
        def kv_idx(i, j):
            return j

    kernel = functools.partial(_flash_attn_kernel, causal=causal, tq=tq, tk=tk, dh=dh,
                               exp_dtype=exp_dtype, approx_recip=approx_recip)
    # NOTE: for tiny B*S/tq on v7x (2 TCs) one could move H out of the block onto a
    # parallel grid axis; kept batched here for step-overhead amortization.
    return pl.pallas_call(
        kernel,
        out_shape=jax.ShapeDtypeStruct((B, S, D), out_dtype),
        grid_spec=pltpu.PrefetchScalarGridSpec(
            num_scalar_prefetch=0,
            grid=(B, S // tq, S // tk),
            in_specs=[
                pl.BlockSpec((1, H, tq, dh), lambda b, i, j: (b, 0, i, 0)),            # Q heads
                pl.BlockSpec((1, H, tk, dh), lambda b, i, j: (b, 1, kv_idx(i, j), 0)),  # K heads
                pl.BlockSpec((1, H, tk, dh), lambda b, i, j: (b, 2, kv_idx(i, j), 0)),  # V heads
            ],
            out_specs=pl.BlockSpec((1, tq, D), lambda b, i, j: (b, i, 0)),
            scratch_shapes=[
                pltpu.VMEM((H, tq, 1), jnp.float32),    # running row max
                pltpu.VMEM((H, tq, 1), jnp.float32),    # running denominator
                pltpu.VMEM((H, tq, dh), jnp.float32),   # output accumulator
            ],
        ),
        compiler_params=pltpu.CompilerParams(
            dimension_semantics=("parallel", "parallel", "arbitrary"),
            vmem_limit_bytes=_VMEM_LIMIT),
    )(qkv, qkv, qkv)


# ----------------------------------------------------------------------------
# Full module forward
# ----------------------------------------------------------------------------
def self_attention(x, w_in, b_in, w_out, b_out, *, n_heads, causal=False,
                   mxu_dtype=jnp.bfloat16, exp_dtype=None,
                   q_tile=None, kv_tile=None):
    """x: (B, S, D); w_in: (D, 3D); b_in: (1, 3D); w_out: (D, D); b_out: (1, D).

    Weights are stored pre-transposed (y = x @ W + b), matching nn.Linear's x @ W.T + b.
    mxu_dtype: storage/MXU dtype for activations & weights (None => exact f32 path).
    exp_dtype: dtype for the softmax exp stream (bf16 only recommended on v6e/v7x).
    """
    B, S, D = x.shape
    dh = D // n_heads
    out_dtype = x.dtype

    # ---- one-time parameter prep (free relative to the matmuls) ----------------
    scale = 1.0 / math.sqrt(dh)
    w_in = jnp.concatenate([w_in[:, :D] * scale, w_in[:, D:]], axis=1)   # fold 1/sqrt(dh) into Q
    b_in = jnp.concatenate([b_in[:, :D] * scale, b_in[:, D:]], axis=1)
    if mxu_dtype is not None:
        x = x.astype(mxu_dtype)          # bf16 storage halves x / W / qkv / attn HBM traffic
        w_in = w_in.astype(mxu_dtype)
        w_out = w_out.astype(mxu_dtype)
    store_dtype = x.dtype
    if exp_dtype is None:
        exp_dtype = jnp.float32

    # Stage 1: fused QKV projection, written directly head-major (B, 3H, S, dh).
    qkv = _qkv_proj(x, w_in, b_in, n_heads=n_heads, d_head=dh, out_dtype=store_dtype)

    # Stage 2: flash attention; reads head-major blocks, writes (B, S, D) directly,
    # so no wrapper transpose/reshape copies on either side.
    attn = _flash_attention(qkv, n_heads=n_heads, causal=causal, out_dtype=store_dtype,
                            exp_dtype=exp_dtype, approx_recip=(mxu_dtype is not None),
                            q_tile=q_tile, kv_tile=kv_tile)

    # Stage 3: output projection back to the input dtype.
    return _out_proj(attn, w_out, b_out, out_dtype=out_dtype)


# ----------------------------------------------------------------------------
# Pure-JAX reference (matches the PyTorch module)
# ----------------------------------------------------------------------------
def _reference(x, w_in, b_in, w_out, b_out, *, n_heads, causal=False):
    B, S, D = x.shape
    dh = D // n_heads
    qkv = x @ w_in + b_in
    q, k, v = jnp.split(qkv, 3, axis=-1)

    def heads(t):
        return t.reshape(B, S, n_heads, dh).transpose(0, 2, 1, 3)

    q, k, v = heads(q), heads(k), heads(v)
    s = jnp.einsum("bhqd,bhkd->bhqk", q, k)
    if causal:
        mask = jnp.triu(jnp.ones((S, S), dtype=bool), 1)
        s = jnp.where(mask, -jnp.inf, s)
    s = s / math.sqrt(dh)
    p = jax.nn.softmax(s, axis=-1)
    o = jnp.einsum("bhqk,bhkd->bhqd", p, v)
    o = o.transpose(0, 2, 1, 3).reshape(B, S, D)
    return o @ w_out + b_out


if __name__ == "__main__":
    # Small shapes consistent with the module: batch=2, seq=8, emb_dim=32, heads=4.
    B, S, D, H = 2, 8, 32, 4
    key = jax.random.PRNGKey(0)
    kx, k1, k2, k3, k4 = jax.random.split(key, 5)

    x = jax.random.normal(kx, (B, S, D), dtype=jnp.float32)
    w_in = jax.random.normal(k1, (D, 3 * D), dtype=jnp.float32) * (1.0 / math.sqrt(D))
    b_in = jax.random.normal(k2, (1, 3 * D), dtype=jnp.float32) * 0.02
    w_out = jax.random.normal(k3, (D, D), dtype=jnp.float32) * (1.0 / math.sqrt(D))
    b_out = jax.random.normal(k4, (1, D), dtype=jnp.float32) * 0.02

    # Exact-semantics path (f32 storage, exact softmax normalization): tight check.
    for causal in (False, True):
        out = self_attention(x, w_in, b_in, w_out, b_out,
                             n_heads=H, causal=causal, mxu_dtype=None)
        out = jax.block_until_ready(out)
        ref = _reference(x, w_in, b_in, w_out, b_out, n_heads=H, causal=causal)
        assert out.shape == (B, S, D)
        assert jnp.allclose(out, ref, atol=2e-4, rtol=2e-4), f"mismatch causal={causal}"

    # Multi-tile exercise (4 q-tiles x 4 kv-tiles): covers the causal DMA clamp,
    # compute skip, diagonal-only masking, and the multi-step online-softmax carry.
    S2 = 32
    x2 = jax.random.normal(kx, (B, S2, D), dtype=jnp.float32)
    for causal in (False, True):
        out = self_attention(x2, w_in, b_in, w_out, b_out, n_heads=H, causal=causal,
                             mxu_dtype=None, q_tile=8, kv_tile=8)
        out = jax.block_until_ready(out)
        ref = _reference(x2, w_in, b_in, w_out, b_out, n_heads=H, causal=causal)
        assert jnp.allclose(out, ref, atol=2e-4, rtol=2e-4), f"tiled mismatch causal={causal}"

    # bf16-storage fast path (v6e/v7x tuning: bf16 MXU + bf16 exp + approx reciprocal).
    # On v5e keep exp_dtype=None (f32 exp).  Smoke-tolerance: the f32 path above is the
    # tight correctness check.
    out_bf16 = self_attention(x, w_in, b_in, w_out, b_out, n_heads=H, causal=True,
                              mxu_dtype=jnp.bfloat16, exp_dtype=jnp.bfloat16)
    out_bf16 = jax.block_until_ready(out_bf16)
    ref = _reference(x, w_in, b_in, w_out, b_out, n_heads=H, causal=True)
    assert jnp.allclose(out_bf16.astype(jnp.float32), ref,
                        atol=1e-1, rtol=1e-1), "bf16 path mismatch"

    print("KERNEL_OK")
</pallas_src>

<mosaic_0001>
module attributes {stable_mosaic.version = 11 : i64} {
  func.func @_qkv_proj_kernel(%arg0: i32, %arg1: i32, %arg2: i32, %arg3: memref<1x8x32xf32, #tpu.memory_space<vmem>>, %arg4: memref<32x96xf32, #tpu.memory_space<vmem>>, %arg5: memref<1x96xf32, #tpu.memory_space<vmem>>, %arg6: memref<1x12x8x8xf32, #tpu.memory_space<vmem>>) attributes {dimension_semantics = [#tpu.dimension_semantics<parallel>, #tpu.dimension_semantics<parallel>, #tpu.dimension_semantics<parallel>], iteration_bounds = array<i64: 2, 1, 1>, scalar_prefetch = 0 : i64, scratch_operands = 0 : i64, tpu.core_type = #tpu.core_type<tc>, window_params = [{transform_indices = @transform_0, window_bounds = array<i64: 1, 8, 32>}, {transform_indices = @transform_1, window_bounds = array<i64: 32, 96>}, {transform_indices = @transform_2, window_bounds = array<i64: 1, 96>}, {transform_indices = @transform_3, window_bounds = array<i64: 1, 12, 8, 8>}]} {
    %c0 = arith.constant 0 : index
    %c0_0 = arith.constant 0 : index
    %c0_1 = arith.constant 0 : index
    %0 = vector.load %arg3[%c0, %c0_0, %c0_1] : memref<1x8x32xf32, #tpu.memory_space<vmem>>, vector<1x8x32xf32>
    %1 = vector.shape_cast %0 : vector<1x8x32xf32> to vector<8x32xf32>
    %c0_2 = arith.constant 0 : index
    %c0_3 = arith.constant 0 : index
    %2 = vector.load %arg4[%c0_2, %c0_3] : memref<32x96xf32, #tpu.memory_space<vmem>>, vector<32x96xf32>
    %cst = arith.constant dense<0.000000e+00> : vector<8x96xf32>
    %3 = tpu.matmul %1, %2, %cst {dimension_numbers = #tpu.dot_dimension_numbers<[1], [0], [0], [1], [0, 0, 1, 1], [], []>} : vector<8x32xf32>, vector<32x96xf32>, vector<8x96xf32> -> vector<8x96xf32>
    %c0_4 = arith.constant 0 : index
    %c0_5 = arith.constant 0 : index
    %4 = vector.load %arg5[%c0_4, %c0_5] : memref<1x96xf32, #tpu.memory_space<vmem>>, vector<1x96xf32>
    %5 = vector.broadcast %4 : vector<1x96xf32> to vector<8x96xf32>
    %6 = arith.addf %3, %5 : vector<8x96xf32>
    %7 = vector.extract_strided_slice %6 {offsets = [0, 0], sizes = [8, 8], strides = [1, 1]} : vector<8x96xf32> to vector<8x8xf32>
    %c0_6 = arith.constant 0 : index
    %c0_7 = arith.constant 0 : index
    %c0_8 = arith.constant 0 : index
    %c0_9 = arith.constant 0 : index
    %8 = vector.load %arg6[%c0_6, %c0_7, %c0_8, %c0_9] : memref<1x12x8x8xf32, #tpu.memory_space<vmem>>, vector<1x1x8x8xf32>
    %9 = vector.shape_cast %8 : vector<1x1x8x8xf32> to vector<8x8xf32>
    %10 = vector.shape_cast %7 : vector<8x8xf32> to vector<1x1x8x8xf32>
    tpu.vector_store %arg6[%c0_6, %c0_7, %c0_8, %c0_9], %10 {strides = array<i32>} : memref<1x12x8x8xf32, #tpu.memory_space<vmem>>, vector<1x1x8x8xf32>,
    %11 = vector.extract_strided_slice %6 {offsets = [0, 8], sizes = [8, 8], strides = [1, 1]} : vector<8x96xf32> to vector<8x8xf32>
    %c0_10 = arith.constant 0 : index
    %c1 = arith.constant 1 : index
    %c0_11 = arith.constant 0 : index
    %c0_12 = arith.constant 0 : index
    %12 = vector.load %arg6[%c0_10, %c1, %c0_11, %c0_12] : memref<1x12x8x8xf32, #tpu.memory_space<vmem>>, vector<1x1x8x8xf32>
    %13 = vector.shape_cast %12 : vector<1x1x8x8xf32> to vector<8x8xf32>
    %14 = vector.shape_cast %11 : vector<8x8xf32> to vector<1x1x8x8xf32>
    tpu.vector_store %arg6[%c0_10, %c1, %c0_11, %c0_12], %14 {strides = array<i32>} : memref<1x12x8x8xf32, #tpu.memory_space<vmem>>, vector<1x1x8x8xf32>,
    %15 = vector.extract_strided_slice %6 {offsets = [0, 16], sizes = [8, 8], strides = [1, 1]} : vector<8x96xf32> to vector<8x8xf32>
    %c0_13 = arith.constant 0 : index
    %c2 = arith.constant 2 : index
    %c0_14 = arith.constant 0 : index
    %c0_15 = arith.constant 0 : index
    %16 = vector.load %arg6[%c0_13, %c2, %c0_14, %c0_15] : memref<1x12x8x8xf32, #tpu.memory_space<vmem>>, vector<1x1x8x8xf32>
    %17 = vector.shape_cast %16 : vector<1x1x8x8xf32> to vector<8x8xf32>
    %18 = vector.shape_cast %15 : vector<8x8xf32> to vector<1x1x8x8xf32>
    tpu.vector_store %arg6[%c0_13, %c2, %c0_14, %c0_15], %18 {strides = array<i32>} : memref<1x12x8x8xf32, #tpu.memory_space<vmem>>, vector<1x1x8x8xf32>,
    %19 = vector.extract_strided_slice %6 {offsets = [0, 24], sizes = [8, 8], strides = [1, 1]} : vector<8x96xf32> to vector<8x8xf32>
    %c0_16 = arith.constant 0 : index
    %c3 = arith.constant 3 : index
    %c0_17 = arith.constant 0 : index
    %c0_18 = arith.constant 0 : index
    %20 = vector.load %arg6[%c0_16, %c3, %c0_17, %c0_18] : memref<1x12x8x8xf32, #tpu.memory_space<vmem>>, vector<1x1x8x8xf32>
    %21 = vector.shape_cast %20 : vector<1x1x8x8xf32> to vector<8x8xf32>
    %22 = vector.shape_cast %19 : vector<8x8xf32> to vector<1x1x8x8xf32>
    tpu.vector_store %arg6[%c0_16, %c3, %c0_17, %c0_18], %22 {strides = array<i32>} : memref<1x12x8x8xf32, #tpu.memory_space<vmem>>, vector<1x1x8x8xf32>,
    %23 = vector.extract_strided_slice %6 {offsets = [0, 32], sizes = [8, 8], strides = [1, 1]} : vector<8x96xf32> to vector<8x8xf32>
    %c0_19 = arith.constant 0 : index
    %c4 = arith.constant 4 : index
    %c0_20 = arith.constant 0 : index
    %c0_21 = arith.constant 0 : index
    %24 = vector.load %arg6[%c0_19, %c4, %c0_20, %c0_21] : memref<1x12x8x8xf32, #tpu.memory_space<vmem>>, vector<1x1x8x8xf32>
    %25 = vector.shape_cast %24 : vector<1x1x8x8xf32> to vector<8x8xf32>
    %26 = vector.shape_cast %23 : vector<8x8xf32> to vector<1x1x8x8xf32>
    tpu.vector_store %arg6[%c0_19, %c4, %c0_20, %c0_21], %26 {strides = array<i32>} : memref<1x12x8x8xf32, #tpu.memory_space<vmem>>, vector<1x1x8x8xf32>,
    %27 = vector.extract_strided_slice %6 {offsets = [0, 40], sizes = [8, 8], strides = [1, 1]} : vector<8x96xf32> to vector<8x8xf32>
    %c0_22 = arith.constant 0 : index
    %c5 = arith.constant 5 : index
    %c0_23 = arith.constant 0 : index
    %c0_24 = arith.constant 0 : index
    %28 = vector.load %arg6[%c0_22, %c5, %c0_23, %c0_24] : memref<1x12x8x8xf32, #tpu.memory_space<vmem>>, vector<1x1x8x8xf32>
    %29 = vector.shape_cast %28 : vector<1x1x8x8xf32> to vector<8x8xf32>
    %30 = vector.shape_cast %27 : vector<8x8xf32> to vector<1x1x8x8xf32>
    tpu.vector_store %arg6[%c0_22, %c5, %c0_23, %c0_24], %30 {strides = array<i32>} : memref<1x12x8x8xf32, #tpu.memory_space<vmem>>, vector<1x1x8x8xf32>,
    %31 = vector.extract_strided_slice %6 {offsets = [0, 48], sizes = [8, 8], strides = [1, 1]} : vector<8x96xf32> to vector<8x8xf32>
    %c0_25 = arith.constant 0 : index
    %c6 = arith.constant 6 : index
    %c0_26 = arith.constant 0 : index
    %c0_27 = arith.constant 0 : index
    %32 = vector.load %arg6[%c0_25, %c6, %c0_26, %c0_27] : memref<1x12x8x8xf32, #tpu.memory_space<vmem>>, vector<1x1x8x8xf32>
    %33 = vector.shape_cast %32 : vector<1x1x8x8xf32> to vector<8x8xf32>
    %34 = vector.shape_cast %31 : vector<8x8xf32> to vector<1x1x8x8xf32>
    tpu.vector_store %arg6[%c0_25, %c6, %c0_26, %c0_27], %34 {strides = array<i32>} : memref<1x12x8x8xf32, #tpu.memory_space<vmem>>, vector<1x1x8x8xf32>,
    %35 = vector.extract_strided_slice %6 {offsets = [0, 56], sizes = [8, 8], strides = [1, 1]} : vector<8x96xf32> to vector<8x8xf32>
    %c0_28 = arith.constant 0 : index
    %c7 = arith.constant 7 : index
    %c0_29 = arith.constant 0 : index
    %c0_30 = arith.constant 0 : index
    %36 = vector.load %arg6[%c0_28, %c7, %c0_29, %c0_30] : memref<1x12x8x8xf32, #tpu.memory_space<vmem>>, vector<1x1x8x8xf32>
    %37 = vector.shape_cast %36 : vector<1x1x8x8xf32> to vector<8x8xf32>
    %38 = vector.shape_cast %35 : vector<8x8xf32> to vector<1x1x8x8xf32>
    tpu.vector_store %arg6[%c0_28, %c7, %c0_29, %c0_30], %38 {strides = array<i32>} : memref<1x12x8x8xf32, #tpu.memory_space<vmem>>, vector<1x1x8x8xf32>,
    %39 = vector.extract_strided_slice %6 {offsets = [0, 64], sizes = [8, 8], strides = [1, 1]} : vector<8x96xf32> to vector<8x8xf32>
    %c0_31 = arith.constant 0 : index
    %c8 = arith.constant 8 : index
    %c0_32 = arith.constant 0 : index
    %c0_33 = arith.constant 0 : index
    %40 = vector.load %arg6[%c0_31, %c8, %c0_32, %c0_33] : memref<1x12x8x8xf32, #tpu.memory_space<vmem>>, vector<1x1x8x8xf32>
    %41 = vector.shape_cast %40 : vector<1x1x8x8xf32> to vector<8x8xf32>
    %42 = vector.shape_cast %39 : vector<8x8xf32> to vector<1x1x8x8xf32>
    tpu.vector_store %arg6[%c0_31, %c8, %c0_32, %c0_33], %42 {strides = array<i32>} : memref<1x12x8x8xf32, #tpu.memory_space<vmem>>, vector<1x1x8x8xf32>,
    %43 = vector.extract_strided_slice %6 {offsets = [0, 72], sizes = [8, 8], strides = [1, 1]} : vector<8x96xf32> to vector<8x8xf32>
    %c0_34 = arith.constant 0 : index
    %c9 = arith.constant 9 : index
    %c0_35 = arith.constant 0 : index
    %c0_36 = arith.constant 0 : index
    %44 = vector.load %arg6[%c0_34, %c9, %c0_35, %c0_36] : memref<1x12x8x8xf32, #tpu.memory_space<vmem>>, vector<1x1x8x8xf32>
    %45 = vector.shape_cast %44 : vector<1x1x8x8xf32> to vector<8x8xf32>
    %46 = vector.shape_cast %43 : vector<8x8xf32> to vector<1x1x8x8xf32>
    tpu.vector_store %arg6[%c0_34, %c9, %c0_35, %c0_36], %46 {strides = array<i32>} : memref<1x12x8x8xf32, #tpu.memory_space<vmem>>, vector<1x1x8x8xf32>,
    %47 = vector.extract_strided_slice %6 {offsets = [0, 80], sizes = [8, 8], strides = [1, 1]} : vector<8x96xf32> to vector<8x8xf32>
    %c0_37 = arith.constant 0 : index
    %c10 = arith.constant 10 : index
    %c0_38 = arith.constant 0 : index
    %c0_39 = arith.constant 0 : index
    %48 = vector.load %arg6[%c0_37, %c10, %c0_38, %c0_39] : memref<1x12x8x8xf32, #tpu.memory_space<vmem>>, vector<1x1x8x8xf32>
    %49 = vector.shape_cast %48 : vector<1x1x8x8xf32> to vector<8x8xf32>
    %50 = vector.shape_cast %47 : vector<8x8xf32> to vector<1x1x8x8xf32>
    tpu.vector_store %arg6[%c0_37, %c10, %c0_38, %c0_39], %50 {strides = array<i32>} : memref<1x12x8x8xf32, #tpu.memory_space<vmem>>, vector<1x1x8x8xf32>,
    %51 = vector.extract_strided_slice %6 {offsets = [0, 88], sizes = [8, 8], strides = [1, 1]} : vector<8x96xf32> to vector<8x8xf32>
    %c0_40 = arith.constant 0 : index
    %c11 = arith.constant 11 : index
    %c0_41 = arith.constant 0 : index
    %c0_42 = arith.constant 0 : index
    %52 = vector.load %arg6[%c0_40, %c11, %c0_41, %c0_42] : memref<1x12x8x8xf32, #tpu.memory_space<vmem>>, vector<1x1x8x8xf32>
    %53 = vector.shape_cast %52 : vector<1x1x8x8xf32> to vector<8x8xf32>
    %54 = vector.shape_cast %51 : vector<8x8xf32> to vector<1x1x8x8xf32>
    tpu.vector_store %arg6[%c0_40, %c11, %c0_41, %c0_42], %54 {strides = array<i32>} : memref<1x12x8x8xf32, #tpu.memory_space<vmem>>, vector<1x1x8x8xf32>,
    return
  }
  func.func @transform_0(%arg0: i32, %arg1: i32, %arg2: i32) -> (i32, i32, i32) {
    %c0_i32 = arith.constant 0 : i32
    %c0_i32_0 = arith.constant 0 : i32
    return %arg0, %arg2, %c0_i32 : i32, i32, i32
  }
  func.func @transform_1(%arg0: i32, %arg1: i32, %arg2: i32) -> (i32, i32) {
    %c0_i32 = arith.constant 0 : i32
    %c0_i32_0 = arith.constant 0 : i32
    return %c0_i32, %arg1 : i32, i32
  }
  func.func @transform_2(%arg0: i32, %arg1: i32, %arg2: i32) -> (i32, i32) {
    %c0_i32 = arith.constant 0 : i32
    %c0_i32_0 = arith.constant 0 : i32
    return %c0_i32, %arg1 : i32, i32
  }
  func.func @transform_3(%arg0: i32, %arg1: i32, %arg2: i32) -> (i32, i32, i32, i32) {
    %c0_i32 = arith.constant 0 : i32
    %c0_i32_0 = arith.constant 0 : i32
    return %arg0, %arg1, %arg2, %c0_i32 : i32, i32, i32, i32
  }
}

</mosaic_0001>

<bundles_post_ra>
// kernel: tpu_custom_call.1
= control target key start
LH: loop header
LB: loop body
LE: loop exit
PB: predicated region body
PF: predicated region fallthrough
CT: control target
= control target key end

     0   :  { %8 = vsyncpa [#allocation3], 0  ;;  %s961_s0 = inlined_call_operand.hbm [shape: f32[2,8,32], index: 0, kind: input, shape index: {}]   ;;  %s962_s1 = inlined_call_operand.hbm [shape: f32[32,96], index: 1, kind: input, shape index: {}]   ;;  %s963_s2 = inlined_call_operand.vmem [shape: f32[1,96], index: 2, kind: input, shape index: {}]   ;;  %s964_s3 = inlined_call_operand.vmem [shape: f32[2,12,8,8], index: 3, kind: output, shape index: {}]  }
   0x1   :  { %10 = vsyncpa [#allocation3 + $0x1], 0 }
   0x2   :  { %11 = vsyncpa [#allocation5], 0  ;;  %s811_s12 = smov 0   ;;  %s813_s13 = smov 0  }
   0x3   :  { %s815_s14 = smov 0   ;;  %s817_s15 = smov 0  }
   0x4   :  { %s819_s16 = smov 0   ;;  %s821_s17 = smov 0  }
   0x5 LB: > { %s539_s18 = sadd.s32 4294967295, %s772_s17   ;;  %p58_p0 = scmp.ne.s32.totalorder %s756_s13, %s752_s12  ;;  %s772_s17 = sphi %s821_s17, %s17_s17   ;;  %s768_s16 = sphi %s819_s16, %s974_s16   ;;  %s764_s15 = sphi %s817_s15, %s973_s15   ;;  %s760_s14 = sphi %s815_s14, %s972_s14   ;;  %s756_s13 = sphi %s813_s13, %s971_s13   ;;  %s752_s12 = sphi %s811_s12, %s970_s12  }
   0x6   : > { %p841_p1 = scmp.eq.s32.totalorder %s539_s18, 0  ;;  %p541_p2 = scmp.ge.s32.totalorder %s772_s17, 1 }
   0x7   : > { %p151_p3 = scmp.lt.s32.totalorder %s772_s17, 3  ;;  %s774_s22 = smov [#allocation4]  }
   0x8   : > { %p849_p4 = por %p841_p1, %p58_p0  ;;  %s165_s23 = sshll.u32 %s774_s22, 4  ;;  %s166_s23 = int_to_ptr.vmem [resolvable:$true] %s165_s23 }
   0x9   : > { %p853_p5 = pnand %p541_p2, %p151_p3  ;;  %s36_s25 = sadd.s32 1, %s768_s16 }
   0xa   : > { %s675_s26 = scalar_lea.vmem %s166_s23, 512  ;;  %p683_p12 = scmp.lt.s32.totalorder %s166_s23, %s166_s23 }
   0xb   : > { %p589_p6 = pneg %p853_p5  ;;  %p676_p9 = scmp.ne.s32.totalorder %s166_s23, %s675_s26 }
   0xc   : > { %p684_p13 = scmp.lt.s32.totalorder %s675_s26, %s675_s26 }
   0xd   : > { %p861_p7 = pnand %p589_p6, %p841_p1 }
   0xe   : > { %p685_p0 = por %p684_p13, %p683_p12 }
   0xf   : > { %p666_p8 = pneg %p861_p7 }
  0x11   : > { %p678_p10 = pnand %p676_p9, %p666_p8 }
  0x13   : > { %p679_p11 = pneg %p678_p10 }
  0x15   : > { %p686_p2 = pnand %p685_p0, %p679_p11 }
  0x17   : > { %689 = shalt.err (!%p686_p2)
}
  0x18   : > { %s775_s27 = smov 128   ;;  %s776_s28 = smov 8  }
  0x19   : > { %592 = dma.hbm_to_vmem [thread:$0]  (!%p861_p7), %s962_s1, 512, %s166_s23, [#allocation5], %s775_s27, %s775_s27, %s776_s28  }
  0x1a   : > { %p38_p3 = scmp.ge.s32.totalorder %s36_s25, 2  ;;  %s45_s4 = sadd.s32 1, %s760_s14 }
  0x1b   : > { %p52_p6 = scmp.ne.s32.totalorder %s760_s14, %s756_s13  ;;  %p53_p8 = scmp.eq.s32.totalorder %s772_s17, 0 }
  0x1c   : > { %s976_s25 = smov (%p38_p3, %s36_s25), 0  ;;  %p598_p10 = scmp.lt.s32.totalorder %s772_s17, 2 }
  0x1d   : > { %p54_p9 = por %p53_p8, %p52_p6  ;;  %s40_s5 = ssub.s32 %s768_s16, %s976_s25 }
  0x1e   : > { %s185_s6 = sand.u32 1, %s760_s14   ;;  %p43_p11 = scmp.eq.s32.totalorder %s40_s5, 0 }
  0x1f   : > { %s545_s7 = sshll.u32 %s185_s6, 3  ;;  %s546_s8 = sshll.u32 %s768_s16, 7 }
  0x20   : > { %s885_s9 = scalar_select %p43_p11, %s760_s14, %s45_s4  }
  0x21   : > { %s195_s12 = scalar_lea.hbm %s961_s0, %s546_s8  ;;  %s189_s18 = scalar_lea.vmem [#allocation2], %s545_s7 }
  0x22   : > { %s197_s22 = sshll.u32 %s189_s18, 4  ;;  %p890_p7 = pnand %p598_p10, %p54_p9  ;;  %s198_s22 = int_to_ptr.vmem [resolvable:$true] %s197_s22 }
  0x23   : > { %s186_s24 = scalar_lea.sflag [#allocation3], %s185_s6  ;;  %s703_s26 = scalar_lea.vmem %s198_s22, 128 }
  0x24   : > { %p692_p12 = pneg %p890_p7  ;;  %p704_p13 = scmp.ne.s32.totalorder %s198_s22, %s703_s26 }
  0x25   : > { %s777_s27 = smov [#allocation2]  }
  0x26   : > { %p706_p0 = pnand %p704_p13, %p692_p12  ;;  %s708_s28 = sshll.u32 %s777_s27, 4  ;;  %s709_s28 = int_to_ptr.vmem [resolvable:$false] %s708_s28 }
  0x27   : > { %s710_s29 = scalar_lea.vmem %s709_s28, 256  ;;  %p711_p3 = scmp.lt.s32.totalorder %s198_s22, %s709_s28 }
  0x28   : > { %p707_p2 = pneg %p706_p0  ;;  %p712_p6 = scmp.lt.s32.totalorder %s710_s29, %s703_s26 }
  0x2a   : > { %p713_p8 = por %p712_p6, %p711_p3 }
  0x2c   : > { %p714_p9 = pnand %p713_p8, %p707_p2 }
  0x2e   : > { %717 = shalt.err (!%p714_p9)
}
  0x2f   : > { %596 = dma.hbm_to_vmem [thread:$0]  (!%p890_p7), %s195_s12, 128, %s198_s22, %s186_s24  }
  0x30   : > { %206 = sbr.rel (%p853_p5) target bundleno = 396 (0x18c), region = 32  ;;  %s208_s30 = sand.u32 (!%p853_p5), 1, %s756_s13  }
  0x31   : > { %s548_s4 = sshll.u32 (!%p853_p5), %s208_s30, 3  ;;  %s209_s5 = scalar_lea.sflag (!%p853_p5), [#allocation3], %s208_s30 }
  0x32   : > { %s212_s6 = scalar_lea.vmem (!%p853_p5), [#allocation2], %s548_s4 }
  0x35   : > { %743 = dma.done.wait (%p849_p4), %s209_s5, 128  }
  0x36   : > { %745 = vsyncadd (%p849_p4), %s209_s5, 4294967168 }
  0x37   : > { %747 = dma.done.wait (%p841_p1), [#allocation5], 512  }
  0x38   : > { %749 = vsyncadd (%p841_p1), [#allocation5], 4294966784  ;;  %v778_v0 = vmov 0.0   ;;  %vm779_vm0 = vmmov 0   ;;  %v269_v1 = vld [vmem:[#allocation4 + $0x18] sm:$0xff]  ;;  %v268_v2 = vld [vmem:[#allocation4 + $0x10] sm:$0xff] }
  0x39   : > { %571 = vmatprep.subr.mxu0 %v778_v0  ;;  %579 = vmatprep.mubr.msk.f32.mxu0 %vm779_vm0, %v778_v0  ;;  %v267_v3 = vld [vmem:[#allocation4 + $0x8] sm:$0xff]  ;;  %v266_v4 = vld [vmem:[#allocation4] sm:$0xff]  ;;  %v265_v5 = vld [vmem:[%s212_s6] sm:$0xff]  ;;  %vm277_vm1 = vcmask 261120   ;;  %p253_p1 = scmp.lt.s32.totalorder %s764_s15, 1  ;;  %vm351_vm2 = vcmask 64512  }
  0x3a   : > { %572 = vmatpush3.msra.mxu0 %v269_v1  ;;  %v551_v6 = vld [vmem:[%s963_s2] ss:$0 sm:$0xff]  ;;  %s780_s11 = smov 104   ;;  %s781_s12 = smov 120  }
  0x3b   : > { %573 = vmatprep.subr.mxu0 %v778_v0  ;;  %s978_s15 = smov (!%p253_p1, %s764_s15), 1  ;;  %s783_s18 = smov 112  }
  0x3c   : > { %574 = vmatpush3.msra.mxu0 %v268_v2  ;;  %s582_s19 = smul.u32 96, %s978_s15  ;;  %s782_s15 = smov 96  }
  0x3d   : > { %575 = vmatprep.subr.mxu0 %v778_v0  ;;  %s784_s22 = smov 80   ;;  %s785_s23 = smov 88  }
  0x3e   : > { %576 = vmatpush3.msra.mxu0 %v267_v3  ;;  %s917_s10 = scalar_lea.vmem %s964_s3, %s582_s19  ;;  %s786_s24 = smov 64  }
  0x3f   : > { %577 = vmatprep.subr.mxu0 %v778_v0  ;;  %s787_s26 = smov 72   ;;  %s788_s27 = smov 48  }
  0x40   : > { %578 = vmatpush3.msra.mxu0 %v266_v4  ;;  %s789_s28 = smov 56   ;;  %s790_s29 = smov 40  }
  0x41   : > { %580 = vmatmul.mubr.msk.f32.vlgmr.msra.gmra.mxu0 %vm277_vm1, %v265_v5 }
 0x101   : > { %v347_v7 = vpop.f32.mrf.mxu0 }
 0x102   : > { %v348_v8 = vadd.f32 %v551_v6, %v347_v7 }
 0x103   : > { %v581_v9 = vpop.f32.mrf.mxu0 }
 0x104   : > { %364 = vrot.lane.b32.xlu1 %v348_v8, %s780_s11  ;;  %354 = vrot.lane.b32.xlu0 %v348_v8, %s781_s12  ;;  %352 = vst.msk [vmem:[%s917_s10] sm:$0xff] %vm351_vm2, %v348_v8 }
 0x108   : > { %369 = vrot.lane.b32.xlu1 %v348_v8, %s782_s15  ;;  %359 = vrot.lane.b32.xlu0 %v348_v8, %s783_s18 }
 0x10c   : > { %379 = vrot.lane.b32.xlu1 %v348_v8, %s784_s22  ;;  %374 = vrot.lane.b32.xlu0 %v348_v8, %s785_s23 }
 0x110   : > { %389 = vrot.lane.b32.xlu1 %v348_v8, %s786_s24  ;;  %384 = vrot.lane.b32.xlu0 %v348_v8, %s787_s26 }
 0x114   : > { %399 = vrot.lane.b32.xlu1 %v348_v8, %s788_s27  ;;  %394 = vrot.lane.b32.xlu0 %v348_v8, %s789_s28 }
 0x118   : > { %404 = vrot.lane.b32.xlu0 %v348_v8, %s790_s29 }
 0x176   : > { %v365_v10 = vpop.permute.xlu1 %364  ;;  %v355_v11 = vpop.permute.xlu0 %354 }
 0x177   : > { %555 = vst.msk [vmem:[%s917_s10 + $0x18] sm:$0xff] %vm351_vm2, %v365_v10  ;;  %553 = vst.msk [vmem:[%s917_s10 + $0x8] sm:$0xff] %vm351_vm2, %v355_v11 }
 0x17a   : > { %v370_v12 = vpop.permute.xlu1 %369  ;;  %v360_v13 = vpop.permute.xlu0 %359 }
 0x17b   : > { %556 = vst.msk [vmem:[%s917_s10 + $0x20] sm:$0xff] %vm351_vm2, %v370_v12  ;;  %554 = vst.msk [vmem:[%s917_s10 + $0x10] sm:$0xff] %vm351_vm2, %v360_v13 }
 0x17e   : > { %v380_v14 = vpop.permute.xlu1 %379  ;;  %v375_v15 = vpop.permute.xlu0 %374 }
 0x17f   : > { %558 = vst.msk [vmem:[%s917_s10 + $0x30] sm:$0xff] %vm351_vm2, %v380_v14  ;;  %557 = vst.msk [vmem:[%s917_s10 + $0x28] sm:$0xff] %vm351_vm2, %v375_v15 }
 0x182   : > { %v390_v16 = vpop.permute.xlu1 %389  ;;  %v385_v17 = vpop.permute.xlu0 %384 }
 0x183   : > { %560 = vst.msk [vmem:[%s917_s10 + $0x40] sm:$0xff] %vm351_vm2, %v390_v16  ;;  %559 = vst.msk [vmem:[%s917_s10 + $0x38] sm:$0xff] %vm351_vm2, %v385_v17 }
 0x186   : > { %v400_v18 = vpop.permute.xlu1 %399  ;;  %v395_v19 = vpop.permute.xlu0 %394 }
 0x187   : > { %562 = vst.msk [vmem:[%s917_s10 + $0x50] sm:$0xff] %vm351_vm2, %v400_v18  ;;  %561 = vst.msk [vmem:[%s917_s10 + $0x48] sm:$0xff] %vm351_vm2, %v395_v19 }
 0x18a   : > { %v405_v20 = vpop.permute.xlu0 %404 }
 0x18b   : > { %563 = vst.msk [vmem:[%s917_s10 + $0x58] sm:$0xff] %vm351_vm2, %v405_v20 }
 0x18c PF: > { %s17_s17 = sadd.s32 1, %s772_s17   ;;  %s970_s12 = smov %s756_s13 }
 0x18d   : > { %p14_p4 = scmp.ge.s32.totalorder %s17_s17, 4   ;;  %s971_s13 = smov %s760_s14 }
 0x18e   : > { %s972_s14 = smov %s885_s9  ;;  %s973_s15 = smov %s768_s16 }
 0x18f   : > { %s974_s16 = smov %s976_s25  ;;  %16 = sbr.rel (!%p14_p4) target bundleno = 5 (0x5), region = 91 }
 0x194   :  { %445 = vsyncpa [#allocation3], 1 }
 0x195   :  { %447 = vsyncpa [#allocation3 + $0x1], 1 }
 0x196   :  { %448 = vsyncpa [#allocation5], 1 }

</bundles_post_ra>
